<compile_context>
chip_gen: v6e
topology: v6e:2x2x1
jax: 0.10.0
libtpu: 0.0.40
codegen_flags: <defaults>
</compile_context>

<pallas_src>
import functools

import jax
import jax.numpy as jnp
from jax.experimental import pallas as pl
from jax.experimental.pallas import tpu as pltpu

_VMEM_LIMIT_BYTES = 32 * 1024 * 1024      # scoped VMEM; safe on v5e/v6e/v7x
_VMEM_TILE_BUDGET = 20 * 1024 * 1024      # cap for the double-buffered working set


def _round_up(x: int, m: int) -> int:
    return ((x + m - 1) // m) * m


def _keep_threshold(drop_rate: float) -> int:
    """uint32 threshold such that P(hash < thr) == 1 - drop_rate."""
    keep_p = 1.0 - float(drop_rate)
    thr = int(round(keep_p * (1 << 32)))
    return max(0, min(thr, (1 << 32) - 1))


def _bernoulli_keep_hash(node_ids_u32, seed_u32, keep_threshold: int):
    """Counter-based Bernoulli(1 - drop_rate) keep decision per node id.

    murmur3 fmix32 of (node_id ^ seed * golden_ratio); pure elementwise uint32
    ops, so it lowers to VPU int instructions inside the kernel and is also
    usable as a plain-JAX reference outside it.
    """
    h = node_ids_u32 ^ (seed_u32 * jnp.uint32(0x9E3779B9))
    h = h ^ (h >> 16)
    h = h * jnp.uint32(0x85EBCA6B)
    h = h ^ (h >> 13)
    h = h * jnp.uint32(0xC2B2AE35)
    h = h ^ (h >> 16)
    return h < jnp.uint32(keep_threshold)


def _dropnode_kernel(seed_ref, ei_ref, ea_ref, ei_out_ref, ea_out_ref,
                     *, keep_threshold: int):
    # ei_ref : (2, TILE_E) int32 — src row 0, dst row 1 (PyG convention)
    # ea_ref : (F, TILE_E)       — edge_attr transposed (lane-dense in E)
    ei = ei_ref[...]
    seed_u = seed_ref[0].astype(jnp.uint32)

    node_keep = _bernoulli_keep_hash(ei.astype(jnp.uint32), seed_u,
                                     keep_threshold)          # (2, TILE_E) bool
    edge_keep = jnp.logical_and(node_keep[0:1, :],
                                node_keep[1:2, :])            # (1, TILE_E) bool

    ei_out_ref[...] = jnp.where(edge_keep, ei, jnp.int32(-1))
    # (1, TILE_E) mask broadcasts over F sublanes — no transpose, lane-dense store.
    zero = jnp.zeros((), dtype=ea_out_ref.dtype)
    ea_out_ref[...] = jnp.where(edge_keep, ea_ref[...], zero)


def _choose_tile(E: int, F: int, tile_e: int, attr_itemsize: int) -> int:
    """Largest lane-aligned tile whose double-buffered VMEM working set fits."""
    # per edge: ei in+out (2 bufs * 2 arrays * 2 rows * 4 B)
    #         + ea in+out (2 bufs * 2 arrays * F * itemsize)
    bytes_per_edge = 2 * (2 * 2 * 4 + 2 * F * attr_itemsize)
    cap = max(128, _VMEM_TILE_BUDGET // bytes_per_edge)
    tile = min(int(tile_e), int(cap), _round_up(E, 128))
    return max(128, (tile // 128) * 128)


def drop_node_fe(edge_index, edge_attr_fe, *, drop_rate: float,
                 num_nodes: int = None, seed: int = 0,
                 tile_e: int = 16384, core_parallel: bool = False):
    """Training-mode DropNode, lane-dense (F, E) edge_attr layout (no transposes).

    num_nodes is accepted for API parity with the PyTorch module but is not
    needed: keep decisions are hashed directly from the node ids in edge_index.
    Set core_parallel=True on v7x to shard the edge axis over both TensorCores.
    """
    del num_nodes
    E = edge_index.shape[1]
    F = edge_attr_fe.shape[0]

    ei = edge_index.astype(jnp.int32)

    if drop_rate <= 0.0:
        # Exact "no drop" (avoids the 1-in-2^32 hash==0xFFFFFFFF clamp artifact).
        return ei, edge_attr_fe, jnp.ones((E,), dtype=jnp.bool_)

    tile = _choose_tile(E, F, tile_e, jnp.dtype(edge_attr_fe.dtype).itemsize)
    grid = (pl.cdiv(E, tile),)   # ragged final block: OOB writes are dropped

    thr = _keep_threshold(drop_rate)
    kernel = functools.partial(_dropnode_kernel, keep_threshold=thr)
    seed_arr = jnp.asarray([seed], dtype=jnp.int32)

    sem = (pltpu.CORE_PARALLEL,) if core_parallel else ("arbitrary",)

    ei_out, ea_out_fe = pl.pallas_call(
        kernel,
        grid=grid,
        in_specs=[
            pl.BlockSpec(memory_space=pltpu.MemorySpace.SMEM),   # seed scalar
            pl.BlockSpec((2, tile), lambda i: (0, i)),           # edge_index tile
            pl.BlockSpec((F, tile), lambda i: (0, i)),           # edge_attr (F, E) tile
        ],
        out_specs=(
            pl.BlockSpec((2, tile), lambda i: (0, i)),
            pl.BlockSpec((F, tile), lambda i: (0, i)),
        ),
        out_shape=(
            jax.ShapeDtypeStruct((2, E), jnp.int32),
            jax.ShapeDtypeStruct((F, E), edge_attr_fe.dtype),
        ),
        compiler_params=pltpu.CompilerParams(
            dimension_semantics=sem,
            vmem_limit_bytes=_VMEM_LIMIT_BYTES,
        ),
    )(seed_arr, ei, edge_attr_fe)

    # Dropped edges were written as -1; node ids are >= 0, so this is the mask.
    # Reconstructed here (fuses downstream) instead of a 3rd kernel output.
    edge_mask = ei_out[0] >= 0
    return ei_out, ea_out_fe, edge_mask


def drop_node(edge_index, edge_attr, *, drop_rate: float,
              num_nodes: int = None, seed: int = 0,
              tile_e: int = 16384, core_parallel: bool = False):
    """PyG-layout convenience wrapper: edge_attr is (E, F) like the torch module.

    The two transposes here each cost a full HBM pass over edge_attr; prefer
    drop_node_fe with (F, E) edge_attr in performance-critical code.
    (Eval mode would just return the inputs unchanged.)
    """
    ei_out, ea_out_fe, edge_mask = drop_node_fe(
        edge_index, jnp.transpose(edge_attr), drop_rate=drop_rate,
        num_nodes=num_nodes, seed=seed, tile_e=tile_e,
        core_parallel=core_parallel)
    return ei_out, jnp.transpose(ea_out_fe), edge_mask


# TODO(synk): dynamic-shape compaction (`nodes[mask]` boolean indexing / a
# shrunken (2, E_kept) output) has no static-shape Pallas equivalent; callers
# filter with `edge_mask`.


if __name__ == "__main__":
    key = jax.random.PRNGKey(0)
    k1, k2 = jax.random.split(key)

    num_nodes = 37
    E = 600            # not a multiple of 128 -> exercises ragged final block
    F = 8
    drop_rate = 0.5
    seed = 0

    # edge_index: int32 (PyTorch uses int64; TPU kernels use int32 indices)
    edge_index = jax.random.randint(k1, (2, E), 0, num_nodes, dtype=jnp.int32)
    edge_attr = jax.random.normal(k2, (E, F), dtype=jnp.float32)

    # Small tile to exercise a multi-block grid plus the ragged tail block.
    ei_out, ea_out, edge_mask = drop_node(
        edge_index, edge_attr, drop_rate=drop_rate, num_nodes=num_nodes,
        seed=seed, tile_e=256)
    jax.block_until_ready((ei_out, ea_out, edge_mask))

    assert ei_out.shape == (2, E) and ea_out.shape == (E, F) and edge_mask.shape == (E,)

    # Reference: same counter-based Bernoulli hash in plain JAX.
    thr = _keep_threshold(drop_rate)
    ep_keep = _bernoulli_keep_hash(edge_index.astype(jnp.uint32),
                                   jnp.uint32(seed), thr)          # (2, E)
    mask_ref = jnp.logical_and(ep_keep[0], ep_keep[1])             # (E,)
    assert bool(jnp.all(edge_mask == mask_ref))

    # Dropped edges are -1 / zero-attr, kept edges are unchanged.
    keep = edge_mask
    assert bool(jnp.all(jnp.where(keep[None, :], ei_out == edge_index, ei_out == -1)))
    assert bool(jnp.all(jnp.where(keep[:, None], ea_out == edge_attr, ea_out == 0.0)))

    # Lane-dense (F, E) fast path with the default (large, VMEM-capped) tile.
    ei_out2, ea_out_fe, mask2 = drop_node_fe(
        edge_index, jnp.transpose(edge_attr), drop_rate=drop_rate, seed=seed)
    jax.block_until_ready((ei_out2, ea_out_fe, mask2))
    assert bool(jnp.all(mask2 == mask_ref))
    assert bool(jnp.all(ei_out2 == ei_out))
    assert bool(jnp.all(ea_out_fe == jnp.transpose(ea_out)))

    # drop_rate == 0.0 keeps every edge exactly (special-cased threshold).
    ei_keep, ea_keep, mask_keep = drop_node(
        edge_index, edge_attr, drop_rate=0.0, seed=seed)
    jax.block_until_ready((ei_keep, ea_keep, mask_keep))
    assert bool(jnp.all(mask_keep))
    assert bool(jnp.all(ei_keep == edge_index))
    assert bool(jnp.all(ea_keep == edge_attr))

    print("KERNEL_OK")
</pallas_src>

<mosaic_0001>
module attributes {stable_mosaic.version = 11 : i64} {
  func.func @_dropnode_kernel(%arg0: i32, %arg1: memref<1xi32, #tpu.memory_space<smem>>, %arg2: memref<2x256xi32, #tpu.memory_space<vmem>>, %arg3: memref<8x256xf32, #tpu.memory_space<vmem>>, %arg4: memref<2x256xi32, #tpu.memory_space<vmem>>, %arg5: memref<8x256xf32, #tpu.memory_space<vmem>>) attributes {dimension_semantics = [#tpu.dimension_semantics<arbitrary>], iteration_bounds = array<i64: 3>, scalar_prefetch = 0 : i64, scratch_operands = 0 : i64, tpu.core_type = #tpu.core_type<tc>, window_params = [{transform_indices = @transform_0, window_bounds = array<i64: 1>}, {transform_indices = @transform_1, window_bounds = array<i64: 2, 256>}, {transform_indices = @transform_2, window_bounds = array<i64: 8, 256>}, {transform_indices = @transform_3, window_bounds = array<i64: 2, 256>}, {transform_indices = @transform_4, window_bounds = array<i64: 8, 256>}]} {
    %c0 = arith.constant 0 : index
    %c0_0 = arith.constant 0 : index
    %0 = vector.load %arg2[%c0, %c0_0] : memref<2x256xi32, #tpu.memory_space<vmem>>, vector<2x256xi32>
    %c0_1 = arith.constant 0 : index
    %1 = memref.load %arg1[%c0_1] : memref<1xi32, #tpu.memory_space<smem>>
    %c-1640531527_i32 = arith.constant -1640531527 : i32
    %2 = arith.muli %1, %c-1640531527_i32 : i32
    %3 = vector.broadcast %2 : i32 to vector<2x256xi32>
    %4 = arith.xori %0, %3 : vector<2x256xi32>
    %c16_i32 = arith.constant 16 : i32
    %5 = vector.broadcast %c16_i32 : i32 to vector<2x256xi32>
    %6 = arith.shrui %4, %5 : vector<2x256xi32>
    %7 = arith.xori %4, %6 : vector<2x256xi32>
    %c-2048144789_i32 = arith.constant -2048144789 : i32
    %8 = vector.broadcast %c-2048144789_i32 : i32 to vector<2x256xi32>
    %9 = arith.muli %7, %8 : vector<2x256xi32>
    %c13_i32 = arith.constant 13 : i32
    %10 = vector.broadcast %c13_i32 : i32 to vector<2x256xi32>
    %11 = arith.shrui %9, %10 : vector<2x256xi32>
    %12 = arith.xori %9, %11 : vector<2x256xi32>
    %c-1028477387_i32 = arith.constant -1028477387 : i32
    %13 = vector.broadcast %c-1028477387_i32 : i32 to vector<2x256xi32>
    %14 = arith.muli %12, %13 : vector<2x256xi32>
    %c16_i32_2 = arith.constant 16 : i32
    %15 = vector.broadcast %c16_i32_2 : i32 to vector<2x256xi32>
    %16 = arith.shrui %14, %15 : vector<2x256xi32>
    %17 = arith.xori %14, %16 : vector<2x256xi32>
    %c-2147483648_i32 = arith.constant -2147483648 : i32
    %18 = vector.broadcast %c-2147483648_i32 : i32 to vector<2x256xi32>
    %19 = arith.cmpi ult, %17, %18 : vector<2x256xi32>
    %20 = vector.extract_strided_slice %19 {offsets = [0, 0], sizes = [1, 256], strides = [1, 1]} : vector<2x256xi1> to vector<1x256xi1>
    %21 = vector.extract_strided_slice %19 {offsets = [1, 0], sizes = [1, 256], strides = [1, 1]} : vector<2x256xi1> to vector<1x256xi1>
    %22 = arith.andi %20, %21 : vector<1x256xi1>
    %c-1_i32 = arith.constant -1 : i32
    %23 = vector.shape_cast %22 : vector<1x256xi1> to vector<1x256xi1>
    %24 = vector.broadcast %23 : vector<1x256xi1> to vector<2x256xi1>
    %25 = vector.broadcast %c-1_i32 : i32 to vector<2x256xi32>
    %26 = arith.select %24, %0, %25 : vector<2x256xi1>, vector<2x256xi32>
    %c0_3 = arith.constant 0 : index
    %c0_4 = arith.constant 0 : index
    %27 = vector.load %arg4[%c0_3, %c0_4] : memref<2x256xi32, #tpu.memory_space<vmem>>, vector<2x256xi32>
    tpu.vector_store %arg4[%c0_3, %c0_4], %26 {strides = array<i32>} : memref<2x256xi32, #tpu.memory_space<vmem>>, vector<2x256xi32>,
    %c0_5 = arith.constant 0 : index
    %c0_6 = arith.constant 0 : index
    %28 = vector.load %arg3[%c0_5, %c0_6] : memref<8x256xf32, #tpu.memory_space<vmem>>, vector<8x256xf32>
    %cst = arith.constant 0.000000e+00 : f32
    %29 = vector.shape_cast %22 : vector<1x256xi1> to vector<1x256xi1>
    %30 = vector.broadcast %29 : vector<1x256xi1> to vector<8x256xi1>
    %31 = vector.broadcast %cst : f32 to vector<8x256xf32>
    %32 = arith.select %30, %28, %31 : vector<8x256xi1>, vector<8x256xf32>
    %c0_7 = arith.constant 0 : index
    %c0_8 = arith.constant 0 : index
    %33 = vector.load %arg5[%c0_7, %c0_8] : memref<8x256xf32, #tpu.memory_space<vmem>>, vector<8x256xf32>
    tpu.vector_store %arg5[%c0_7, %c0_8], %32 {strides = array<i32>} : memref<8x256xf32, #tpu.memory_space<vmem>>, vector<8x256xf32>,
    return
  }
  func.func @transform_0(%arg0: i32) -> i32 {
    %c0_i32 = arith.constant 0 : i32
    %c0_i32_0 = arith.constant 0 : i32
    return %c0_i32 : i32
  }
  func.func @transform_1(%arg0: i32) -> (i32, i32) {
    %c0_i32 = arith.constant 0 : i32
    %c0_i32_0 = arith.constant 0 : i32
    return %c0_i32, %arg0 : i32, i32
  }
  func.func @transform_2(%arg0: i32) -> (i32, i32) {
    %c0_i32 = arith.constant 0 : i32
    %c0_i32_0 = arith.constant 0 : i32
    return %c0_i32, %arg0 : i32, i32
  }
  func.func @transform_3(%arg0: i32) -> (i32, i32) {
    %c0_i32 = arith.constant 0 : i32
    %c0_i32_0 = arith.constant 0 : i32
    return %c0_i32, %arg0 : i32, i32
  }
  func.func @transform_4(%arg0: i32) -> (i32, i32) {
    %c0_i32 = arith.constant 0 : i32
    %c0_i32_0 = arith.constant 0 : i32
    return %c0_i32, %arg0 : i32, i32
  }
}

</mosaic_0001>

<bundles_post_ra>
// kernel: tpu_custom_call.1
= control target key start
LH: loop header
LB: loop body
LE: loop exit
PB: predicated region body
PF: predicated region fallthrough
CT: control target
= control target key end

     0   :  { %s1038_s0 = inlined_call_operand.<no memory space> [shape: s32[1], index: 0, kind: input, shape index: {}]   ;;  %s1039_s1 = inlined_call_operand.hbm [shape: s32[2,600], index: 1, kind: input, shape index: {}]   ;;  %s1040_s2 = inlined_call_operand.hbm [shape: f32[8,600], index: 2, kind: input, shape index: {}]   ;;  %s1041_s3 = inlined_call_operand.hbm [shape: s32[2,600], index: 3, kind: output, shape index: {0}]   ;;  %s1042_s4 = inlined_call_operand.hbm [shape: f32[8,600], index: 4, kind: output, shape index: {1}]  }
   0x1   :  { %10 = sst [smem:[#allocation2]] %s1038_s0 }
   0x2   :  { %11 = vsyncpa [#allocation4], 0 }
   0x3   :  { %13 = vsyncpa [#allocation4 + $0x1], 0 }
   0x4   :  { %14 = vsyncpa [#allocation7], 0 }
   0x5   :  { %16 = vsyncpa [#allocation7 + $0x1], 0 }
   0x6   :  { %17 = vsyncpa [#allocation5], 0 }
   0x7   :  { %19 = vsyncpa [#allocation5 + $0x1], 0 }
   0x8   :  { %20 = vsyncpa [#allocation10], 0 }
   0x9   :  { %22 = vsyncpa [#allocation10 + $0x1], 0  ;;  %s806_s17 = smov 0   ;;  %s808_s18 = smov 0  }
   0xa   :  { %s810_s19 = smov 0   ;;  %s812_s20 = smov 0  }
   0xb LB: > { %s827_s0 = sadd.s32 4294967295, %s770_s20   ;;  %s530_s21 = sadd.s32 4294967294, %s770_s20   ;;  %s770_s20 = sphi %s812_s20, %s1055_s20   ;;  %s766_s19 = sphi %s810_s19, %s1054_s19   ;;  %s762_s18 = sphi %s808_s18, %s1053_s18   ;;  %s758_s17 = sphi %s806_s17, %s1052_s17  }
   0xc   : > { %s831_s22 = sadd.s32 1, %s770_s20   ;;  %s56_s23 = sadd.s32 1, %s766_s19 }
   0xd   : > { %s53_s24 = ssub.s32 %s770_s20, %s831_s22  ;;  %p63_p0 = scmp.ne.s32.totalorder %s766_s19, %s762_s18 }
   0xe   : > { %p54_p1 = scmp.eq.s32.totalorder %s53_s24, 0  ;;  %p64_p2 = scmp.eq.s32.totalorder %s770_s20, 0 }
   0xf   : > { %p69_p3 = scmp.ne.s32.totalorder %s762_s18, %s758_s17  ;;  %p70_p4 = scmp.eq.s32.totalorder %s827_s0, 0 }
  0x10   : > { %s843_s25 = scalar_select %p54_p1, %s766_s19, %s56_s23  }
  0x11   : > { %p845_p5 = por %p64_p2, %p63_p0  ;;  %p849_p6 = por %p70_p4, %p69_p3 }
  0x12   : > { %p119_p7 = scmp.eq.s32.totalorder %s827_s0, 2  ;;  %p125_p8 = scmp.eq.s32.totalorder %s530_s21, 2 }
  0x13   : > { %s1045_s27 = scalar_select %p849_p6, 1, 0 }
  0x14   : > { %p854_p9 = por %p119_p7, %p63_p0  ;;  %p858_p10 = por %p125_p8, %p69_p3 }
  0x15   : > { %p532_p11 = scmp.ge.s32.totalorder %s770_s20, 3 }
  0x16   : > { %s1046_s28 = scalar_select %p854_p9, 1, 0 }
  0x17   : > { %s1047_s29 = scalar_select %p858_p10, 1, 0 }
  0x18   : > { %170 = sbr.rel (%p532_p11) target bundleno = 91 (0x5b), region = 20 }
  0x1d   : > { %173 = sbr.rel (!%p845_p5) target bundleno = 60 (0x3c), region = 24  ;;  %s174_s30 = sand.u32 (%p845_p5), 1, %s766_s19  }
  0x1e   : > { %s534_s5 = sshll.u32 (%p845_p5), %s770_s20, 1  ;;  %s533_s6 = sshll.u32 (%p845_p5), %s174_s30, 2 }
  0x1f   : > { %s180_s7 = ssub.s32 (%p845_p5), 5, %s534_s5  ;;  %s870_s10 = scalar_lea.sflag (%p845_p5), [#allocation4], %s174_s30 }
  0x20   : > { %p181_p12 = scmp.lt.s32.totalorder (%p845_p5), %s180_s7, 2  ;;  %s178_s11 = scalar_lea.vmem (%p845_p5), [#allocation3], %s533_s6 }
  0x22   : > { %s1057_s7 = smov (!%p181_p12, %s180_s7), 2 }
  0x23   : > { %s867_s8 = sshll.u32 %s1057_s7, 5 }
  0x24   : > { %s185_s9 = ssub.s32 64, %s867_s8 }
  0x25   : > { %186 = vsyncadd %s870_s10, %s185_s9  ;;  %p536_p13 = scmp.ne.s32.totalorder %s867_s8, 0  ;;  %s570_s12 = sshll.u32 %s770_s20, 6 }
  0x26   : > { %s189_s15 = scalar_lea.hbm %s1039_s1, %s570_s12  ;;  %s192_s16 = sshll.u32 %s178_s11, 4  ;;  %s193_s16 = int_to_ptr.vmem [resolvable:$true] %s192_s16 }
  0x27   : > { %s620_s21 = scalar_lea.hbm %s189_s15, %s867_s8  ;;  %s624_s30 = scalar_lea.hbm %s1039_s1, 160 }
  0x28   : > { %p621_p0 = scmp.ne.s32.totalorder %s189_s15, %s620_s21  ;;  %p625_p3 = scmp.lt.s32.totalorder %s189_s15, %s1039_s1 }
  0x29   : > { %p626_p4 = scmp.lt.s32.totalorder %s624_s30, %s620_s21 }
  0x2a   : > { %p622_p1 = pnand %p621_p0, %p536_p13 }
  0x2b   : > { %p627_p7 = por %p626_p4, %p625_p3 }
  0x2c   : > { %p623_p2 = pneg %p622_p1 }
  0x2e   : > { %p628_p8 = pnand %p627_p7, %p623_p2 }
  0x30   : > { %631 = shalt.err (!%p628_p8)
}
  0x31   : > { %s632_s7 = scalar_lea.vmem %s193_s16, %s867_s8  ;;  %s772_s9 = smov [#allocation3]  }
  0x32   : > { %p633_p11 = scmp.ne.s32.totalorder %s193_s16, %s632_s7  ;;  %s636_s11 = sshll.u32 %s772_s9, 4  ;;  %s637_s11 = int_to_ptr.vmem [resolvable:$false] %s636_s11 }
  0x33   : > { %s638_s12 = scalar_lea.vmem %s637_s11, 128  ;;  %p639_p1 = scmp.lt.s32.totalorder %s193_s16, %s637_s11 }
  0x34   : > { %p634_p12 = pnand %p633_p11, %p536_p13  ;;  %p640_p10 = scmp.lt.s32.totalorder %s638_s12, %s632_s7 }
  0x36   : > { %p635_p0 = pneg %p634_p12  ;;  %p641_p9 = por %p640_p10, %p639_p1 }
  0x38   : > { %p642_p6 = pnand %p641_p9, %p635_p0 }
  0x3a   : > { %645 = shalt.err (!%p642_p6)
}
  0x3b   : > { %195 = dma.hbm_to_vmem [thread:$0]  (%p536_p13), %s189_s15, %s867_s8, %s193_s16, %s870_s10  }
  0x3c PF: > { %198 = sbr.rel (!%p845_p5) target bundleno = 91 (0x5b), region = 28  ;;  %s199_s13 = sand.u32 (%p845_p5), 1, %s766_s19  }
  0x3d   : > { %s541_s14 = sshll.u32 (%p845_p5), %s770_s20, 1  ;;  %s540_s21 = sshll.u32 (%p845_p5), %s199_s13, 4 }
  0x3e   : > { %s205_s23 = ssub.s32 (%p845_p5), 5, %s541_s14  ;;  %s901_s5 = scalar_lea.sflag (%p845_p5), [#allocation7], %s199_s13 }
  0x3f   : > { %p206_p2 = scmp.lt.s32.totalorder (%p845_p5), %s205_s23, 2  ;;  %s203_s8 = scalar_lea.vmem (%p845_p5), [#allocation6], %s540_s21 }
  0x41   : > { %s1059_s23 = smov (!%p206_p2, %s205_s23), 2 }
  0x42   : > { %s898_s24 = sshll.u32 %s1059_s23, 7 }
  0x43   : > { %s210_s30 = ssub.s32 256, %s898_s24 }
  0x44   : > { %211 = vsyncadd %s901_s5, %s210_s30  ;;  %p543_p5 = scmp.ne.s32.totalorder %s898_s24, 0  ;;  %s571_s26 = sshll.u32 %s770_s20, 8 }
  0x45   : > { %s214_s16 = scalar_lea.hbm %s1040_s2, %s571_s26  ;;  %s217_s6 = sshll.u32 %s203_s8, 4  ;;  %s218_s6 = int_to_ptr.vmem [resolvable:$true] %s217_s6 }
  0x46   : > { %s646_s7 = scalar_lea.hbm %s214_s16, %s898_s24  ;;  %s650_s12 = scalar_lea.hbm %s1040_s2, 640 }
  0x47   : > { %p647_p6 = scmp.ne.s32.totalorder %s214_s16, %s646_s7  ;;  %p651_p13 = scmp.lt.s32.totalorder %s214_s16, %s1040_s2 }
  0x48   : > { %p652_p3 = scmp.lt.s32.totalorder %s650_s12, %s646_s7 }
  0x49   : > { %p648_p9 = pnand %p647_p6, %p543_p5 }
  0x4a   : > { %p653_p4 = por %p652_p3, %p651_p13 }
  0x4b   : > { %p649_p10 = pneg %p648_p9 }
  0x4d   : > { %p654_p7 = pnand %p653_p4, %p649_p10 }
  0x4f   : > { %657 = shalt.err (!%p654_p7)
}
  0x50   : > { %s658_s21 = scalar_lea.vmem %s218_s6, %s898_s24  ;;  %s773_s23 = smov [#allocation6]  }
  0x51   : > { %p659_p8 = scmp.ne.s32.totalorder %s218_s6, %s658_s21  ;;  %s662_s30 = sshll.u32 %s773_s23, 4  ;;  %s663_s30 = int_to_ptr.vmem [resolvable:$false] %s662_s30 }
  0x52   : > { %s664_s8 = scalar_lea.vmem %s663_s30, 512  ;;  %p665_p0 = scmp.lt.s32.totalorder %s218_s6, %s663_s30 }
  0x53   : > { %p660_p11 = pnand %p659_p8, %p543_p5  ;;  %p666_p1 = scmp.lt.s32.totalorder %s664_s8, %s658_s21 }
  0x55   : > { %p661_p12 = pneg %p660_p11  ;;  %p667_p2 = por %p666_p1, %p665_p0 }
  0x57   : > { %p668_p6 = pnand %p667_p2, %p661_p12 }
  0x59   : > { %671 = shalt.err (!%p668_p6)
}
  0x5a   : > { %220 = dma.hbm_to_vmem [thread:$0]  (%p543_p5), %s214_s16, %s898_s24, %s218_s6, %s901_s5  }
  0x5b PF: > { %p547_p9 = scmp.ge.s32.totalorder %s770_s20, 1  ;;  %p222_p10 = scmp.lt.s32.totalorder %s770_s20, 4 }
  0x5d   : > { %p223_p13 = pnand %p547_p9, %p222_p10 }
  0x5e   : > { %s928_s26 = sand.u32 (!%p223_p13), 1, %s762_s18   ;;  %p1048_p5 = scmp.ne.s32.totalorder (!%p223_p13), %s1045_s27, 0 }
  0x5f   : > { %226 = sbr.rel (%p223_p13) target bundleno = 206 (0xce), region = 32  ;;  %s548_s10 = sshll.u32 (!%p223_p13), %s928_s26, 2 }
  0x60   : > { %s229_s15 = scalar_lea.sflag (!%p223_p13), [#allocation4], %s928_s26  ;;  %s232_s7 = scalar_lea.vmem (!%p223_p13), [#allocation3], %s548_s10 }
  0x64   : > { %741 = dma.done.wait (%p1048_p5), %s229_s15, 64  }
  0x65   : > { %743 = vsyncadd (%p1048_p5), %s229_s15, 4294967232  ;;  %s549_s24 = sshll.u32 %s928_s26, 4  ;;  %s238_s5 = scalar_lea.sflag [#allocation7], %s928_s26 }
  0x66   : > { %s942_s16 = scalar_lea.vmem [#allocation6], %s549_s24 }
  0x67   : > { %745 = dma.done.wait (%p1048_p5), %s238_s5, 256  }
  0x68   : > { %747 = vsyncadd (%p1048_p5), %s238_s5, 4294967040  ;;  %s297_s6 = sld [smem:[#allocation2]]  ;;  %v296_v0 = vld [vmem:[%s232_s7] sm:$0xf]  ;;  %v316_v8 = vlaneseq  ;;  %v774_v9 = vmov 1983009808  }
  0x69   : > { %v335_v10 = vunpack.c.l.s4 %v774_v9  ;;  %v775_v17 = vmov 0   ;;  %v353_v29 = vld [vmem:[%s942_s16] sm:$0xff]  ;;  %v354_v30 = vld [vmem:[%s942_s16 + $0x8] sm:$0xff]  ;;  %s952_s27 = scalar_lea.vmem [#allocation9], %s549_s24  ;;  %s268_s11 = scalar_lea.vmem [#allocation8], %s548_s10 }
  0x6a   : > { %v317_v13 = vshrl.u32 %v316_v8, 7  ;;  %s360_s12 = scalar_lea.sflag [#allocation5], %s928_s26  ;;  %s365_s13 = scalar_lea.sflag [#allocation10], %s928_s26 }
  0x6b   : > { %v336_v14 = vunpack.c.0.s8 %v335_v10  ;;  %p1049_p3 = scmp.ne.s32.totalorder %s1046_s28, 0 }
  0x6c   : > { %v318_v20 = vsub.s32 0, %v317_v13  ;;  %v322_v21 = vsub.s32 2, %v317_v13  ;;  %s556_s14 = sshll.u32 (%p1049_p3), %s827_s0, 1 }
  0x6d   : > { %v339_v16 = vsub.s32 %v336_v14, %v317_v13  ;;  %s373_s21 = ssub.s32 (%p1049_p3), 5, %s556_s14 }
  0x6e   : > { %s298_s9 = smul.u32 2654435769, %s297_s6  ;;  %p374_p4 = scmp.lt.s32.totalorder (%p1049_p3), %s373_s21, 2 }
  0x6f   : > { %v340_v22 = vrot.slane %v296_v0, %v339_v16 }
  0x70   : > { %v299_v1 = vstv %s298_s9 }
  0x71   : > { %v300_v2 = vxor.u32 %v299_v1, %v296_v0  ;;  %v341_v26 = vcombine.high %v340_v22, %v340_v22 }
  0x73   : > { %v301_v3 = vshrl.u32 %v300_v2, 16 }
  0x75   : > { %v302_v4 = vxor.u32 %v301_v3, %v300_v2 }
  0x77   : > { %v303_v5 = vmul.u32 2246822507, %v302_v4 }
  0x79   : > { %v304_v6 = vshrl.u32 %v303_v5, 13 }
  0x7b   : > { %v305_v7 = vxor.u32 %v304_v6, %v303_v5 }
  0x7d   : > { %v306_v11 = vmul.u32 3266489909, %v305_v7 }
  0x7f   : > { %v307_v12 = vshrl.u32 %v306_v11, 16 }
  0x81   : > { %v308_v15 = vxor.u32 %v307_v12, %v306_v11 }
  0x83   : > { %vm309_vm0 = vcmp.lt.u32.totalorder %v308_v15, 2147483648 }
  0x84   : > { %v310_v18 = vsel %vm309_vm0, 1, %v775_v17 }
  0x85   : > { %v552_v19 = vrot.slane %v310_v18, 9 }
  0x87   : > { %vm313_vm1 = vcmp.ne.s32.totalorder %v552_v19, 0 }
  0x88   : > { %vm314_vm2 = vmand %vm309_vm0, %vm313_vm1 }
  0x89   : > { %v315_v23 = vsel %vm314_vm2, 1, %v775_v17 }
  0x8a   : > { %v319_v24 = vrot.slane %v315_v23, %v318_v20  ;;  %v323_v25 = vrot.slane %v315_v23, %v322_v21 }
  0x8c   : > { %v327_v27 = vrot.slane %v319_v24, %v318_v20  ;;  %v331_v28 = vrot.slane %v323_v25, %v318_v20 }
  0x8e   : > { %vm332_vm3 = vcmp.eq.s32.totalorder %v327_v27, 1  ;;  %vm333_vm4 = vcmp.eq.s32.totalorder %v331_v28, 1  ;;  %371 = sbr.rel (!%p1049_p3) target bundleno = 173 (0xad), region = 44 }
  0x8f   : > { %v342_v31 = vsel %vm332_vm3, %v340_v22, 4294967295  ;;  %v343_v32 = vsel %vm333_vm4, %v341_v26, 4294967295  ;;  %v355_v33 = vsel %vm332_vm3, %v353_v29, 0.0  ;;  %v356_v34 = vsel %vm333_vm4, %v354_v30, 0.0 }
  0x90   : > { %v344_v35 = vcombine.low %v342_v31, %v343_v32  ;;  %357 = vst [vmem:[%s952_s27] sm:$0xff] %v355_v33  ;;  %358 = vst [vmem:[%s952_s27 + $0x8] sm:$0xff] %v356_v34 }
  0x92   : > { %553 = vst.sshfl [vmem:[%s268_s11] sm:$0x33 pattern:$0x76325410] %v344_v35 }
  0x93   : > { %s1061_s21 = smov (!%p374_p4, %s373_s21), 2 }
  0x94   : > { %s963_s23 = sshll.u32 %s1061_s21, 5 }
  0x95   : > { %s378_s30 = ssub.s32 64, %s963_s23 }
  0x96   : > { %379 = vsyncadd %s360_s12, %s378_s30  ;;  %p558_p7 = scmp.ne.s32.totalorder %s963_s23, 0  ;;  %s572_s8 = sshll.u32 %s827_s0, 6 }
  0x97   : > { %s382_s7 = scalar_lea.hbm %s1041_s3, %s572_s8  ;;  %s385_s24 = sshll.u32 %s268_s11, 4  ;;  %s386_s24 = int_to_ptr.vmem [resolvable:$true] %s385_s24 }
  0x98   : > { %s672_s5 = scalar_lea.vmem %s386_s24, %s963_s23  ;;  %s776_s16 = smov [#allocation8]  }
  0x99   : > { %p673_p8 = scmp.ne.s32.totalorder %s386_s24, %s672_s5  ;;  %s676_s6 = sshll.u32 %s776_s16, 4  ;;  %s677_s6 = int_to_ptr.vmem [resolvable:$false] %s676_s6 }
  0x9a   : > { %s678_s9 = scalar_lea.vmem %s677_s6, 128  ;;  %p679_p0 = scmp.lt.s32.totalorder %s386_s24, %s677_s6 }
  0x9b   : > { %p674_p11 = pnand %p673_p8, %p558_p7  ;;  %p680_p1 = scmp.lt.s32.totalorder %s678_s9, %s672_s5 }
  0x9d   : > { %p675_p12 = pneg %p674_p11  ;;  %p681_p2 = por %p680_p1, %p679_p0 }
  0x9f   : > { %p682_p6 = pnand %p681_p2, %p675_p12 }
  0xa1   : > { %685 = shalt.err (!%p682_p6)
}
  0xa2   : > { %s686_s14 = scalar_lea.hbm %s382_s7, %s963_s23  ;;  %s690_s30 = scalar_lea.hbm %s1041_s3, 160 }
  0xa3   : > { %p687_p9 = scmp.ne.s32.totalorder %s382_s7, %s686_s14  ;;  %p691_p5 = scmp.lt.s32.totalorder %s382_s7, %s1041_s3 }
  0xa4   : > { %p692_p3 = scmp.lt.s32.totalorder %s690_s30, %s686_s14 }
  0xa5   : > { %p688_p10 = pnand %p687_p9, %p558_p7 }
  0xa6   : > { %p693_p4 = por %p692_p3, %p691_p5 }
  0xa7   : > { %p689_p13 = pneg %p688_p10 }
  0xa9   : > { %p694_p8 = pnand %p693_p4, %p689_p13 }
  0xab   : > { %697 = shalt.err (!%p694_p8)
}
  0xac   : > { %388 = dma.vmem_to_hbm [thread:$0]  (%p558_p7), %s386_s24, %s963_s23, %s382_s7, %s360_s12  }
  0xad PF: > { %p1050_p11 = scmp.ne.s32.totalorder %s1046_s28, 0 }
  0xae   : > { %s562_s15 = sshll.u32 (%p1050_p11), %s827_s0, 1 }
  0xaf   : > { %391 = sbr.rel (!%p1050_p11) target bundleno = 206 (0xce), region = 48  ;;  %s393_s5 = ssub.s32 (%p1050_p11), 5, %s562_s15 }
  0xb0   : > { %p394_p12 = scmp.lt.s32.totalorder (%p1050_p11), %s393_s5, 2 }
  0xb4   : > { %s1063_s5 = smov (!%p394_p12, %s393_s5), 2 }
  0xb5   : > { %s993_s16 = sshll.u32 %s1063_s5, 7 }
  0xb6   : > { %s398_s6 = ssub.s32 256, %s993_s16 }
  0xb7   : > { %399 = vsyncadd %s365_s13, %s398_s6  ;;  %p564_p7 = scmp.ne.s32.totalorder %s993_s16, 0  ;;  %s573_s28 = sshll.u32 %s827_s0, 8 }
  0xb8   : > { %s402_s7 = scalar_lea.hbm %s1042_s4, %s573_s28  ;;  %s405_s24 = sshll.u32 %s952_s27, 4  ;;  %s406_s24 = int_to_ptr.vmem [resolvable:$true] %s405_s24 }
  0xb9   : > { %s698_s9 = scalar_lea.vmem %s406_s24, %s993_s16  ;;  %s777_s14 = smov [#allocation9]  }
  0xba   : > { %p699_p0 = scmp.ne.s32.totalorder %s406_s24, %s698_s9  ;;  %s702_s11 = sshll.u32 %s777_s14, 4  ;;  %s703_s11 = int_to_ptr.vmem [resolvable:$false] %s702_s11 }
  0xbb   : > { %s704_s21 = scalar_lea.vmem %s703_s11, 512  ;;  %p705_p6 = scmp.lt.s32.totalorder %s406_s24, %s703_s11 }
  0xbc   : > { %p700_p1 = pnand %p699_p0, %p564_p7  ;;  %p706_p9 = scmp.lt.s32.totalorder %s704_s21, %s698_s9 }
  0xbe   : > { %p701_p2 = pneg %p700_p1  ;;  %p707_p10 = por %p706_p9, %p705_p6 }
  0xc0   : > { %p708_p13 = pnand %p707_p10, %p701_p2 }
  0xc2   : > { %711 = shalt.err (!%p708_p13)
}
  0xc3   : > { %s712_s0 = scalar_lea.hbm %s402_s7, %s993_s16  ;;  %s716_s8 = scalar_lea.hbm %s1042_s4, 640 }
  0xc4   : > { %p713_p5 = scmp.ne.s32.totalorder %s402_s7, %s712_s0  ;;  %p717_p8 = scmp.lt.s32.totalorder %s402_s7, %s1042_s4 }
  0xc5   : > { %p718_p11 = scmp.lt.s32.totalorder %s716_s8, %s712_s0 }
  0xc6   : > { %p714_p3 = pnand %p713_p5, %p564_p7 }
  0xc7   : > { %p719_p12 = por %p718_p11, %p717_p8 }
  0xc8   : > { %p715_p4 = pneg %p714_p3 }
  0xca   : > { %p720_p0 = pnand %p719_p12, %p715_p4 }
  0xcc   : > { %723 = shalt.err (!%p720_p0)
}
  0xcd   : > { %408 = dma.vmem_to_hbm [thread:$0]  (%p564_p7), %s406_s24, %s993_s16, %s402_s7, %s365_s13  }
  0xce PF: > { %p585_p1 = scmp.ge.s32.totalorder %s770_s20, 2  ;;  %s417_s5 = sand.u32 1, %s758_s17  }
  0xcf   : > { %p1051_p2 = scmp.ne.s32.totalorder %s1047_s29, 0  ;;  %s418_s6 = scalar_lea.sflag [#allocation5], %s417_s5 }
  0xd1   : > { %p579_p6 = pnand %p585_p1, %p1051_p2 }
  0xd3   : > { %p580_p9 = pneg %p579_p6 }
  0xd5   : > { %749 = dma.done.wait (%p580_p9), %s418_s6, 64  }
  0xd6   : > { %751 = vsyncadd (%p580_p9), %s418_s6, 4294967232  ;;  %s427_s28 = scalar_lea.sflag [#allocation10], %s417_s5 }
  0xd7   : > { %753 = dma.done.wait (%p580_p9), %s427_s28, 256  }
  0xd8   : > { %755 = vsyncadd (%p580_p9), %s427_s28, 4294967040  ;;  %p25_p7 = scmp.ge.s32.totalorder %s831_s22, 5   ;;  %s1052_s17 = smov %s762_s18 }
  0xd9   : > { %s1053_s18 = smov %s766_s19  ;;  %s1054_s19 = smov %s843_s25 }
  0xda   : > { %s1055_s20 = smov %s831_s22  ;;  %27 = sbr.rel (!%p25_p7) target bundleno = 11 (0xb), region = 107 }
  0xdf   :  { %432 = vsyncpa [#allocation4], 1 }
  0xe0   :  { %434 = vsyncpa [#allocation4 + $0x1], 1 }
  0xe1   :  { %435 = vsyncpa [#allocation7], 1 }
  0xe2   :  { %437 = vsyncpa [#allocation7 + $0x1], 1 }
  0xe3   :  { %438 = vsyncpa [#allocation5], 1 }
  0xe4   :  { %440 = vsyncpa [#allocation5 + $0x1], 1 }
  0xe5   :  { %441 = vsyncpa [#allocation10], 1 }
  0xe6   :  { %443 = vsyncpa [#allocation10 + $0x1], 1 }

</bundles_post_ra>
